<compile_context>
chip_gen: v5e
topology: v5e:2x2
jax: 0.10.0
libtpu: 0.0.40
codegen_flags: <defaults>
</compile_context>

<pallas_src>
import functools

import numpy as np
import jax
import jax.numpy as jnp
from jax import lax
from jax.experimental import pallas as pl
from jax.experimental.pallas import tpu as pltpu


def _neco_stats_kernel(d_ref, rot_ref, trn_ref, t_ref, mask_ref, idx_ref,
                       conf_ref, out_ref, *, thr_sq):
    """Per-grid-step kernel over Bt batch items: gather + rigid warp + inlier
    test + masked BCE sufficient statistics, all in lane-dense layouts."""
    d = d_ref[0]        # [Bt, 3, N]  deformed source points (s_pcd + s2t_flow), N on lanes
    rot = rot_ref[0]    # [Bt, 9]     row-major rotation entries
    trn = trn_ref[0]    # [Bt, 3]     translation
    t_m = t_ref[0]      # [Bt, 3, K]  matched target points (vec_6d[..., 3:]), K on lanes
    mask = mask_ref[0]  # [Bt, K]     {0,1} float32 (vec_6d_mask)
    idx = idx_ref[0]    # [Bt, 1, K]  int32 source indices (vec_6d_ind[..., 0])
    conf = conf_ref[0]  # [Bt, K]     predicted inlier confidence

    bt, _, n = d.shape
    k = conf.shape[1]

    # ---- gather of the deformed source points at the match indices --------
    # One exactly-one-hot [Bt, N, K] and a single batched dot (3 output rows);
    # HIGHEST precision keeps the f32 coordinates exact through the MXU.
    iota_n = lax.broadcasted_iota(jnp.int32, (bt, n, k), 1)
    onehot = (iota_n == idx).astype(jnp.float32)                       # [Bt, N, K]
    gdef = jnp.einsum('bcn,bnk->bck', d, onehot,
                      precision=lax.Precision.HIGHEST,
                      preferred_element_type=jnp.float32)              # [Bt, 3, K]
    gx = gdef[:, 0, :]
    gy = gdef[:, 1, :]
    gz = gdef[:, 2, :]                                                 # [Bt, K] each

    # ---- rigid warp of the K gathered points: 9 broadcast FMAs (VPU, f32) --
    # warp(gather(x)) == gather(warp(x)) because the one-hot rows sum to 1.
    d2 = jnp.zeros((bt, k), jnp.float32)
    for c in range(3):
        w = (rot[:, 3 * c + 0:3 * c + 1] * gx
             + rot[:, 3 * c + 1:3 * c + 2] * gy
             + rot[:, 3 * c + 2:3 * c + 3] * gz
             + trn[:, c:c + 1])                                        # [Bt, K]
        diff = w - t_m[:, c, :]
        d2 = d2 + diff * diff

    inlier = (d2 < thr_sq).astype(jnp.float32)                         # [Bt, K]

    # ---- BCE terms (torch.nn.BCELoss clamps the log at -100) ---------------
    logp = jnp.maximum(jnp.log(conf), -100.0)
    log1mp = jnp.maximum(jnp.log(1.0 - conf), -100.0)
    conf_sel = (conf > 0.5).astype(jnp.float32)

    def ssum(x):                                # [Bt, K] -> [Bt, 1]
        return jnp.sum(x, axis=1, keepdims=True)

    masked_count = ssum(mask)                              # # valid matches
    inlier_count = ssum(mask * inlier)                     # # positive labels
    pos_bce = ssum(mask * inlier * (-logp))                # sum BCE over label==1
    neg_bce = ssum(mask * (1.0 - inlier) * (-log1mp))      # sum BCE over label==0
    filt_count = ssum(mask * conf_sel)                     # # kept by conf>0.5
    filt_inlier = ssum(mask * conf_sel * inlier)           # # kept that are inliers
    zero = jnp.zeros((bt, 1), jnp.float32)

    out_ref[0] = jnp.concatenate(
        [masked_count, inlier_count, pos_bce, neg_bce,
         filt_count, filt_inlier, zero, zero], axis=1)                 # [Bt, 8]


def neco_loss_pallas(s_pcd, s2t_flow, batched_rot, batched_trn,
                     vec_6d, vec_6d_mask, vec_6d_ind, inlier_conf,
                     inlier_thr, items_per_step=None):
    s_pcd = jnp.asarray(s_pcd, jnp.float32)
    s2t_flow = jnp.asarray(s2t_flow, jnp.float32)
    rot = jnp.asarray(batched_rot, jnp.float32)
    trn = jnp.asarray(batched_trn, jnp.float32)
    if trn.ndim == 2:                              # mirror torch.unsqueeze(trn, 0)
        trn = trn[None]

    B, N, _ = s_pcd.shape
    K = vec_6d.shape[1]

    # ---- wrapper-side layout plumbing (lane-dense kernel inputs) ------------
    deformed_t = jnp.transpose(s_pcd + s2t_flow, (0, 2, 1))            # [B, 3, N]
    rot_flat = rot.reshape(B, 9)                                       # [B, 9]
    trn2 = jnp.broadcast_to(trn.reshape(trn.shape[0], 3), (B, 3))      # [B, 3]
    vec_t = jnp.transpose(jnp.asarray(vec_6d, jnp.float32)[:, :, 3:6],
                          (0, 2, 1))                                   # [B, 3, K]
    mask_f = jnp.asarray(vec_6d_mask, jnp.float32).reshape(B, K)       # [B, K]
    idx3 = jnp.asarray(vec_6d_ind, jnp.int32)[:, :, 0].reshape(B, 1, K)  # [B, 1, K]
    conf = jnp.asarray(inlier_conf, jnp.float32).reshape(B, K)         # [B, K]

    # ---- batch tiling: Bt items per grid step, bounded by a VMEM budget -----
    if items_per_step is None:
        onehot_budget = 8 * 1024 * 1024                    # keeps v7x (32 MiB scoped) safe
        bt_cap = max(1, onehot_budget // max(1, N * K * 4))
        items_per_step = max(1, min(B, 8, bt_cap))
    Bt = int(items_per_step)
    G = -(-B // Bt)
    B_pad = G * Bt

    def pad_b(x, value=0.0):
        if B_pad == B:
            return x
        pad = [(0, B_pad - B)] + [(0, 0)] * (x.ndim - 1)
        return jnp.pad(x, pad, constant_values=value)

    def to_steps(x):
        return x.reshape((G, Bt) + x.shape[1:])

    d_in = to_steps(pad_b(deformed_t))
    rot_in = to_steps(pad_b(rot_flat))
    trn_in = to_steps(pad_b(trn2))
    t_in = to_steps(pad_b(vec_t))
    mask_in = to_steps(pad_b(mask_f))
    idx_in = to_steps(pad_b(idx3))
    conf_in = to_steps(pad_b(conf, value=0.5))     # benign value for padded items

    kernel = functools.partial(_neco_stats_kernel, thr_sq=float(inlier_thr) ** 2)

    stats = pl.pallas_call(
        kernel,
        out_shape=jax.ShapeDtypeStruct((G, Bt, 8), jnp.float32),
        grid=(G,),
        in_specs=[
            pl.BlockSpec((1, Bt, 3, N), lambda g: (g, 0, 0, 0)),   # deformed pts
            pl.BlockSpec((1, Bt, 9), lambda g: (g, 0, 0)),         # rotation (flat)
            pl.BlockSpec((1, Bt, 3), lambda g: (g, 0, 0)),         # translation
            pl.BlockSpec((1, Bt, 3, K), lambda g: (g, 0, 0, 0)),   # vec_6d[..., 3:]
            pl.BlockSpec((1, Bt, K), lambda g: (g, 0, 0)),         # vec_6d_mask
            pl.BlockSpec((1, Bt, 1, K), lambda g: (g, 0, 0, 0)),   # vec_6d_ind[..., 0]
            pl.BlockSpec((1, Bt, K), lambda g: (g, 0, 0)),         # inlier_conf
        ],
        out_specs=pl.BlockSpec((1, Bt, 8), lambda g: (g, 0, 0)),
        compiler_params=pltpu.CompilerParams(
            dimension_semantics=("parallel",)),
    )(d_in, rot_in, trn_in, t_in, mask_in, idx_in, conf_in)

    stats = stats.reshape(G * Bt, 8)[:B]           # drop padded batch items
    masked_count = stats[:, 0]
    inlier_count = stats[:, 1]
    pos_bce = stats[:, 2]
    neg_bce = stats[:, 3]
    filt_count = stats[:, 4]
    filt_inlier = stats[:, 5]

    # IR Lepard = mean over batches of (#inliers / #valid matches)
    ir_lepard = jnp.mean(inlier_count / jnp.maximum(masked_count, 1.0))

    # weighted BCE over the concatenated (masked) matches
    total = jnp.sum(masked_count)
    pos_total = jnp.sum(inlier_count)
    w_neg = pos_total / jnp.maximum(total, 1.0)
    w_pos = 1.0 - w_neg
    loss = (w_pos * jnp.sum(pos_bce) + w_neg * jnp.sum(neg_bce)) / jnp.maximum(total, 1.0)

    # IR NeCo = mean over batches (that kept >0 matches at conf>0.5) of inlier ratio
    has = filt_count > 0
    per_b = jnp.where(has, filt_inlier / jnp.where(has, filt_count, 1.0), 0.0)
    n_has = jnp.sum(has.astype(jnp.float32))
    ir_neco = jnp.where(n_has > 0, jnp.sum(per_b) / jnp.maximum(n_has, 1.0), 0.0)

    return {'IR Lepard': ir_lepard, 'IR NeCo': ir_neco, 'loss': loss}


def reference_neco_loss(s_pcd, s2t_flow, rot, trn, vec_6d, mask, ind, conf, thr):
    """Pure numpy float32 reference mirroring the PyTorch forward."""
    s_pcd = np.asarray(s_pcd, np.float32)
    s2t_flow = np.asarray(s2t_flow, np.float32)
    rot = np.asarray(rot, np.float32)
    trn = np.asarray(trn, np.float32)
    vec_6d = np.asarray(vec_6d, np.float32)
    mask = np.asarray(mask, bool)
    ind = np.asarray(ind, np.int64)
    conf = np.asarray(conf, np.float32)
    B = s_pcd.shape[0]

    deformed = s_pcd + s2t_flow
    warped = np.einsum('bij,bnj->bni', rot, deformed) + trn.reshape(B, 1, 3)

    rates, masks = [], []
    for i in range(B):
        g = warped[i][ind[i, :, 0]][mask[i]]
        t = vec_6d[i][:, 3:][mask[i]]
        inl = np.sum((g - t) ** 2, axis=1) < thr ** 2
        rates.append(inl.sum() / float(t.shape[0]))
        masks.append(inl)
    ir_lep = float(np.mean(rates))

    labels = np.concatenate(masks).astype(np.float32)
    pred = conf.reshape(-1)[mask.reshape(-1)]
    class_loss = -(labels * np.maximum(np.log(pred), -100.0) +
                   (1.0 - labels) * np.maximum(np.log(1.0 - pred), -100.0))
    w_neg = labels.sum() / labels.shape[0]
    w_pos = 1.0 - w_neg
    weights = np.where(labels >= 0.5, w_pos, w_neg)
    loss = float(np.mean(weights * class_loss))

    ir = []
    for i in range(B):
        f = masks[i][conf[i][mask[i]] > 0.5]
        if f.shape[0] > 0:
            ir.append(f.sum() / float(f.shape[0]))
    ir_neco = float(np.mean(ir)) if len(ir) > 0 else 0.0
    return ir_lep, ir_neco, loss


if __name__ == "__main__":
    B, N, K = 2, 16, 8
    inlier_thr = 0.1

    key = jax.random.PRNGKey(0)
    keys = jax.random.split(key, 10)

    s_pcd = jax.random.normal(keys[0], (B, N, 3), jnp.float32)

    # ragged coarse flow (list of per-batch flows) -> scattered into s2t_flow (JAX glue)
    flow_lens = [10, 16]
    coarse_flow = [0.1 * jax.random.normal(keys[1 + i], (flow_lens[i], 3), jnp.float32)
                   for i in range(B)]
    s2t_flow = jnp.zeros_like(s_pcd)
    for i, cflow in enumerate(coarse_flow):
        s2t_flow = s2t_flow.at[i, :cflow.shape[0]].set(cflow)

    # deterministic rotations about z, random translations
    angles = np.array([0.3, -0.7], np.float32)
    rots = []
    for a in angles:
        c, s = np.cos(a), np.sin(a)
        rots.append(np.array([[c, -s, 0.0], [s, c, 0.0], [0.0, 0.0, 1.0]], np.float32))
    batched_rot = jnp.asarray(np.stack(rots))
    batched_trn = 0.5 * jax.random.normal(keys[3], (B, 3, 1), jnp.float32)

    vec_6d_ind = jax.random.randint(keys[4], (B, K, 2), 0, N).astype(jnp.int32)
    mask_np = np.ones((B, K), bool)
    mask_np[0, 6:] = False
    mask_np[1, 5:] = False
    vec_6d_mask = jnp.asarray(mask_np)

    # build vec_6d so its last 3 columns are near the GT-warped source matches (mix of in/outliers)
    deformed = s_pcd + s2t_flow
    warped = (jnp.einsum('bij,bnj->bni', batched_rot, deformed)
              + batched_trn.reshape(B, 1, 3))
    gathered = jax.vmap(lambda w, i: w[i])(warped, vec_6d_ind[:, :, 0])     # [B, K, 3]
    noise = 0.05 * jax.random.normal(keys[5], (B, K, 3), jnp.float32)
    vec_6d = jnp.concatenate(
        [jax.random.normal(keys[6], (B, K, 3), jnp.float32), gathered + noise], axis=-1)

    inlier_conf = jax.random.uniform(keys[7], (B, K), jnp.float32, 0.05, 0.95)

    out = neco_loss_pallas(s_pcd, s2t_flow, batched_rot, batched_trn,
                           vec_6d, vec_6d_mask, vec_6d_ind, inlier_conf,
                           inlier_thr)
    out = jax.block_until_ready(out)

    ref_lep, ref_neco, ref_loss = reference_neco_loss(
        s_pcd, s2t_flow, batched_rot, batched_trn, vec_6d,
        vec_6d_mask, vec_6d_ind, inlier_conf, inlier_thr)

    np.testing.assert_allclose(float(out['IR Lepard']), ref_lep, rtol=1e-4, atol=1e-4)
    np.testing.assert_allclose(float(out['IR NeCo']), ref_neco, rtol=1e-4, atol=1e-4)
    np.testing.assert_allclose(float(out['loss']), ref_loss, rtol=1e-4, atol=1e-4)

    # TODO(synk): mayavi-based multiview_corr_vis and the unused helper methods
    # (compute_correspondence_loss, match_2_conf_matrix, compute_match_recall)
    # are not part of the forward hot path and are not implemented.

    print("KERNEL_OK")
</pallas_src>

<mosaic_0001>
module attributes {stable_mosaic.version = 11 : i64} {
  func.func @_neco_stats_kernel(%arg0: i32, %arg1: memref<1x2x3x16xf32, #tpu.memory_space<vmem>>, %arg2: memref<1x2x9xf32, #tpu.memory_space<vmem>>, %arg3: memref<1x2x3xf32, #tpu.memory_space<vmem>>, %arg4: memref<1x2x3x8xf32, #tpu.memory_space<vmem>>, %arg5: memref<1x2x8xf32, #tpu.memory_space<vmem>>, %arg6: memref<1x2x1x8xi32, #tpu.memory_space<vmem>>, %arg7: memref<1x2x8xf32, #tpu.memory_space<vmem>>, %arg8: memref<1x2x8xf32, #tpu.memory_space<vmem>>) attributes {dimension_semantics = [#tpu.dimension_semantics<parallel>], iteration_bounds = array<i64: 1>, scalar_prefetch = 0 : i64, scratch_operands = 0 : i64, tpu.core_type = #tpu.core_type<tc>, window_params = [{transform_indices = @transform_0, window_bounds = array<i64: 1, 2, 3, 16>}, {transform_indices = @transform_1, window_bounds = array<i64: 1, 2, 9>}, {transform_indices = @transform_2, window_bounds = array<i64: 1, 2, 3>}, {transform_indices = @transform_3, window_bounds = array<i64: 1, 2, 3, 8>}, {transform_indices = @transform_4, window_bounds = array<i64: 1, 2, 8>}, {transform_indices = @transform_5, window_bounds = array<i64: 1, 2, 1, 8>}, {transform_indices = @transform_6, window_bounds = array<i64: 1, 2, 8>}, {transform_indices = @transform_7, window_bounds = array<i64: 1, 2, 8>}]} {
    %c0 = arith.constant 0 : index
    %c0_0 = arith.constant 0 : index
    %c0_1 = arith.constant 0 : index
    %c0_2 = arith.constant 0 : index
    %0 = vector.load %arg1[%c0, %c0_0, %c0_1, %c0_2] : memref<1x2x3x16xf32, #tpu.memory_space<vmem>>, vector<1x2x3x16xf32>
    %1 = vector.shape_cast %0 : vector<1x2x3x16xf32> to vector<2x3x16xf32>
    %c0_3 = arith.constant 0 : index
    %c0_4 = arith.constant 0 : index
    %c0_5 = arith.constant 0 : index
    %2 = vector.load %arg2[%c0_3, %c0_4, %c0_5] : memref<1x2x9xf32, #tpu.memory_space<vmem>>, vector<1x2x9xf32>
    %3 = vector.shape_cast %2 : vector<1x2x9xf32> to vector<2x9xf32>
    %c0_6 = arith.constant 0 : index
    %c0_7 = arith.constant 0 : index
    %c0_8 = arith.constant 0 : index
    %4 = vector.load %arg3[%c0_6, %c0_7, %c0_8] : memref<1x2x3xf32, #tpu.memory_space<vmem>>, vector<1x2x3xf32>
    %5 = vector.shape_cast %4 : vector<1x2x3xf32> to vector<2x3xf32>
    %c0_9 = arith.constant 0 : index
    %c0_10 = arith.constant 0 : index
    %c0_11 = arith.constant 0 : index
    %c0_12 = arith.constant 0 : index
    %6 = vector.load %arg4[%c0_9, %c0_10, %c0_11, %c0_12] : memref<1x2x3x8xf32, #tpu.memory_space<vmem>>, vector<1x2x3x8xf32>
    %7 = vector.shape_cast %6 : vector<1x2x3x8xf32> to vector<2x3x8xf32>
    %c0_13 = arith.constant 0 : index
    %c0_14 = arith.constant 0 : index
    %c0_15 = arith.constant 0 : index
    %8 = vector.load %arg5[%c0_13, %c0_14, %c0_15] : memref<1x2x8xf32, #tpu.memory_space<vmem>>, vector<1x2x8xf32>
    %9 = vector.shape_cast %8 : vector<1x2x8xf32> to vector<2x8xf32>
    %c0_16 = arith.constant 0 : index
    %c0_17 = arith.constant 0 : index
    %c0_18 = arith.constant 0 : index
    %c0_19 = arith.constant 0 : index
    %10 = vector.load %arg6[%c0_16, %c0_17, %c0_18, %c0_19] : memref<1x2x1x8xi32, #tpu.memory_space<vmem>>, vector<1x2x1x8xi32>
    %11 = vector.shape_cast %10 : vector<1x2x1x8xi32> to vector<2x1x8xi32>
    %c0_20 = arith.constant 0 : index
    %c0_21 = arith.constant 0 : index
    %c0_22 = arith.constant 0 : index
    %12 = vector.load %arg7[%c0_20, %c0_21, %c0_22] : memref<1x2x8xf32, #tpu.memory_space<vmem>>, vector<1x2x8xf32>
    %13 = vector.shape_cast %12 : vector<1x2x8xf32> to vector<2x8xf32>
    %14 = tpu.iota {dimensions = array<i32: 1>} : vector<2x16x8xi32>
    %15 = vector.broadcast %11 : vector<2x1x8xi32> to vector<2x16x8xi32>
    %16 = arith.cmpi eq, %14, %15 : vector<2x16x8xi32>
    %17 = arith.extui %16 : vector<2x16x8xi1> to vector<2x16x8xi32>
    %18 = arith.sitofp %17 : vector<2x16x8xi32> to vector<2x16x8xf32>
    "tpu.trace_start"() <{level = 10 : i32, message = "bcn,bnk->bck"}> : () -> ()
    %cst = arith.constant dense<0.000000e+00> : vector<2x3x8xf32>
    %19 = tpu.matmul %1, %18, %cst {dimension_numbers = #tpu.dot_dimension_numbers<[2], [1], [1], [2], [0, 0, 0, 1, 1, 2], [0], [0]>, precision = #tpu.contract_precision<fp32>} : vector<2x3x16xf32>, vector<2x16x8xf32>, vector<2x3x8xf32> -> vector<2x3x8xf32>
    "tpu.trace_stop"() : () -> ()
    %20 = vector.extract_strided_slice %19 {offsets = [0, 0, 0], sizes = [2, 1, 8], strides = [1, 1, 1]} : vector<2x3x8xf32> to vector<2x1x8xf32>
    %21 = vector.shape_cast %20 : vector<2x1x8xf32> to vector<2x8xf32>
    %22 = vector.extract_strided_slice %19 {offsets = [0, 1, 0], sizes = [2, 1, 8], strides = [1, 1, 1]} : vector<2x3x8xf32> to vector<2x1x8xf32>
    %23 = vector.shape_cast %22 : vector<2x1x8xf32> to vector<2x8xf32>
    %24 = vector.extract_strided_slice %19 {offsets = [0, 2, 0], sizes = [2, 1, 8], strides = [1, 1, 1]} : vector<2x3x8xf32> to vector<2x1x8xf32>
    %25 = vector.shape_cast %24 : vector<2x1x8xf32> to vector<2x8xf32>
    %cst_23 = arith.constant 0.000000e+00 : f32
    %26 = vector.broadcast %cst_23 : f32 to vector<2x8xf32>
    %27 = vector.extract_strided_slice %3 {offsets = [0, 0], sizes = [2, 1], strides = [1, 1]} : vector<2x9xf32> to vector<2x1xf32>
    %28 = vector.broadcast %27 : vector<2x1xf32> to vector<2x8xf32>
    %29 = arith.mulf %28, %21 : vector<2x8xf32>
    %30 = vector.extract_strided_slice %3 {offsets = [0, 1], sizes = [2, 1], strides = [1, 1]} : vector<2x9xf32> to vector<2x1xf32>
    %31 = vector.broadcast %30 : vector<2x1xf32> to vector<2x8xf32>
    %32 = arith.mulf %31, %23 : vector<2x8xf32>
    %33 = arith.addf %29, %32 : vector<2x8xf32>
    %34 = vector.extract_strided_slice %3 {offsets = [0, 2], sizes = [2, 1], strides = [1, 1]} : vector<2x9xf32> to vector<2x1xf32>
    %35 = vector.broadcast %34 : vector<2x1xf32> to vector<2x8xf32>
    %36 = arith.mulf %35, %25 : vector<2x8xf32>
    %37 = arith.addf %33, %36 : vector<2x8xf32>
    %38 = vector.extract_strided_slice %5 {offsets = [0, 0], sizes = [2, 1], strides = [1, 1]} : vector<2x3xf32> to vector<2x1xf32>
    %39 = vector.broadcast %38 : vector<2x1xf32> to vector<2x8xf32>
    %40 = arith.addf %37, %39 : vector<2x8xf32>
    %41 = vector.extract_strided_slice %7 {offsets = [0, 0, 0], sizes = [2, 1, 8], strides = [1, 1, 1]} : vector<2x3x8xf32> to vector<2x1x8xf32>
    %42 = vector.shape_cast %41 : vector<2x1x8xf32> to vector<2x8xf32>
    %43 = arith.subf %40, %42 : vector<2x8xf32>
    %44 = arith.mulf %43, %43 : vector<2x8xf32>
    %45 = arith.addf %26, %44 : vector<2x8xf32>
    %46 = vector.extract_strided_slice %3 {offsets = [0, 3], sizes = [2, 1], strides = [1, 1]} : vector<2x9xf32> to vector<2x1xf32>
    %47 = vector.broadcast %46 : vector<2x1xf32> to vector<2x8xf32>
    %48 = arith.mulf %47, %21 : vector<2x8xf32>
    %49 = vector.extract_strided_slice %3 {offsets = [0, 4], sizes = [2, 1], strides = [1, 1]} : vector<2x9xf32> to vector<2x1xf32>
    %50 = vector.broadcast %49 : vector<2x1xf32> to vector<2x8xf32>
    %51 = arith.mulf %50, %23 : vector<2x8xf32>
    %52 = arith.addf %48, %51 : vector<2x8xf32>
    %53 = vector.extract_strided_slice %3 {offsets = [0, 5], sizes = [2, 1], strides = [1, 1]} : vector<2x9xf32> to vector<2x1xf32>
    %54 = vector.broadcast %53 : vector<2x1xf32> to vector<2x8xf32>
    %55 = arith.mulf %54, %25 : vector<2x8xf32>
    %56 = arith.addf %52, %55 : vector<2x8xf32>
    %57 = vector.extract_strided_slice %5 {offsets = [0, 1], sizes = [2, 1], strides = [1, 1]} : vector<2x3xf32> to vector<2x1xf32>
    %58 = vector.broadcast %57 : vector<2x1xf32> to vector<2x8xf32>
    %59 = arith.addf %56, %58 : vector<2x8xf32>
    %60 = vector.extract_strided_slice %7 {offsets = [0, 1, 0], sizes = [2, 1, 8], strides = [1, 1, 1]} : vector<2x3x8xf32> to vector<2x1x8xf32>
    %61 = vector.shape_cast %60 : vector<2x1x8xf32> to vector<2x8xf32>
    %62 = arith.subf %59, %61 : vector<2x8xf32>
    %63 = arith.mulf %62, %62 : vector<2x8xf32>
    %64 = arith.addf %45, %63 : vector<2x8xf32>
    %65 = vector.extract_strided_slice %3 {offsets = [0, 6], sizes = [2, 1], strides = [1, 1]} : vector<2x9xf32> to vector<2x1xf32>
    %66 = vector.broadcast %65 : vector<2x1xf32> to vector<2x8xf32>
    %67 = arith.mulf %66, %21 : vector<2x8xf32>
    %68 = vector.extract_strided_slice %3 {offsets = [0, 7], sizes = [2, 1], strides = [1, 1]} : vector<2x9xf32> to vector<2x1xf32>
    %69 = vector.broadcast %68 : vector<2x1xf32> to vector<2x8xf32>
    %70 = arith.mulf %69, %23 : vector<2x8xf32>
    %71 = arith.addf %67, %70 : vector<2x8xf32>
    %72 = vector.extract_strided_slice %3 {offsets = [0, 8], sizes = [2, 1], strides = [1, 1]} : vector<2x9xf32> to vector<2x1xf32>
    %73 = vector.broadcast %72 : vector<2x1xf32> to vector<2x8xf32>
    %74 = arith.mulf %73, %25 : vector<2x8xf32>
    %75 = arith.addf %71, %74 : vector<2x8xf32>
    %76 = vector.extract_strided_slice %5 {offsets = [0, 2], sizes = [2, 1], strides = [1, 1]} : vector<2x3xf32> to vector<2x1xf32>
    %77 = vector.broadcast %76 : vector<2x1xf32> to vector<2x8xf32>
    %78 = arith.addf %75, %77 : vector<2x8xf32>
    %79 = vector.extract_strided_slice %7 {offsets = [0, 2, 0], sizes = [2, 1, 8], strides = [1, 1, 1]} : vector<2x3x8xf32> to vector<2x1x8xf32>
    %80 = vector.shape_cast %79 : vector<2x1x8xf32> to vector<2x8xf32>
    %81 = arith.subf %78, %80 : vector<2x8xf32>
    %82 = arith.mulf %81, %81 : vector<2x8xf32>
    %83 = arith.addf %64, %82 : vector<2x8xf32>
    %cst_24 = arith.constant 0.00999999977 : f32
    %84 = vector.broadcast %cst_24 : f32 to vector<2x8xf32>
    %85 = arith.cmpf olt, %83, %84 : vector<2x8xf32>
    %86 = arith.extui %85 : vector<2x8xi1> to vector<2x8xi32>
    %87 = arith.sitofp %86 : vector<2x8xi32> to vector<2x8xf32>
    %88 = math.log %13 : vector<2x8xf32>
    %cst_25 = arith.constant -1.000000e+02 : f32
    %89 = vector.broadcast %cst_25 : f32 to vector<2x8xf32>
    %90 = arith.maximumf %88, %89 : vector<2x8xf32>
    %cst_26 = arith.constant 1.000000e+00 : f32
    %91 = vector.broadcast %cst_26 : f32 to vector<2x8xf32>
    %92 = arith.subf %91, %13 : vector<2x8xf32>
    %93 = math.log %92 : vector<2x8xf32>
    %cst_27 = arith.constant -1.000000e+02 : f32
    %94 = vector.broadcast %cst_27 : f32 to vector<2x8xf32>
    %95 = arith.maximumf %93, %94 : vector<2x8xf32>
    %cst_28 = arith.constant 5.000000e-01 : f32
    %96 = vector.broadcast %cst_28 : f32 to vector<2x8xf32>
    %97 = arith.cmpf ogt, %13, %96 : vector<2x8xf32>
    %98 = arith.extui %97 : vector<2x8xi1> to vector<2x8xi32>
    %99 = arith.sitofp %98 : vector<2x8xi32> to vector<2x8xf32>
    %cst_29 = arith.constant dense<0.000000e+00> : vector<2xf32>
    %100 = vector.multi_reduction <add>, %9, %cst_29 [1] : vector<2x8xf32> to vector<2xf32>
    %101 = vector.shape_cast %100 : vector<2xf32> to vector<2x1xf32>
    %102 = arith.mulf %9, %87 : vector<2x8xf32>
    %cst_30 = arith.constant dense<0.000000e+00> : vector<2xf32>
    %103 = vector.multi_reduction <add>, %102, %cst_30 [1] : vector<2x8xf32> to vector<2xf32>
    %104 = vector.shape_cast %103 : vector<2xf32> to vector<2x1xf32>
    %105 = arith.mulf %9, %87 : vector<2x8xf32>
    %cst_31 = arith.constant 0.000000e+00 : f32
    %106 = vector.broadcast %cst_31 : f32 to vector<2x8xf32>
    %107 = arith.subf %106, %90 : vector<2x8xf32>
    %108 = arith.mulf %105, %107 : vector<2x8xf32>
    %cst_32 = arith.constant dense<0.000000e+00> : vector<2xf32>
    %109 = vector.multi_reduction <add>, %108, %cst_32 [1] : vector<2x8xf32> to vector<2xf32>
    %110 = vector.shape_cast %109 : vector<2xf32> to vector<2x1xf32>
    %cst_33 = arith.constant 1.000000e+00 : f32
    %111 = vector.broadcast %cst_33 : f32 to vector<2x8xf32>
    %112 = arith.subf %111, %87 : vector<2x8xf32>
    %113 = arith.mulf %9, %112 : vector<2x8xf32>
    %cst_34 = arith.constant 0.000000e+00 : f32
    %114 = vector.broadcast %cst_34 : f32 to vector<2x8xf32>
    %115 = arith.subf %114, %95 : vector<2x8xf32>
    %116 = arith.mulf %113, %115 : vector<2x8xf32>
    %cst_35 = arith.constant dense<0.000000e+00> : vector<2xf32>
    %117 = vector.multi_reduction <add>, %116, %cst_35 [1] : vector<2x8xf32> to vector<2xf32>
    %118 = vector.shape_cast %117 : vector<2xf32> to vector<2x1xf32>
    %119 = arith.mulf %9, %99 : vector<2x8xf32>
    %cst_36 = arith.constant dense<0.000000e+00> : vector<2xf32>
    %120 = vector.multi_reduction <add>, %119, %cst_36 [1] : vector<2x8xf32> to vector<2xf32>
    %121 = vector.shape_cast %120 : vector<2xf32> to vector<2x1xf32>
    %122 = arith.mulf %9, %99 : vector<2x8xf32>
    %123 = arith.mulf %122, %87 : vector<2x8xf32>
    %cst_37 = arith.constant dense<0.000000e+00> : vector<2xf32>
    %124 = vector.multi_reduction <add>, %123, %cst_37 [1] : vector<2x8xf32> to vector<2xf32>
    %125 = vector.shape_cast %124 : vector<2xf32> to vector<2x1xf32>
    %cst_38 = arith.constant 0.000000e+00 : f32
    %126 = vector.broadcast %cst_38 : f32 to vector<2x1xf32>
    %127 = tpu.concatenate %101, %104, %110, %118, %121, %125, %126, %126 in 1 : vector<2x1xf32>, vector<2x1xf32>, vector<2x1xf32>, vector<2x1xf32>, vector<2x1xf32>, vector<2x1xf32>, vector<2x1xf32>, vector<2x1xf32> -> vector<2x8xf32>
    %c0_39 = arith.constant 0 : index
    %c0_40 = arith.constant 0 : index
    %c0_41 = arith.constant 0 : index
    %128 = vector.load %arg8[%c0_39, %c0_40, %c0_41] : memref<1x2x8xf32, #tpu.memory_space<vmem>>, vector<1x2x8xf32>
    %129 = vector.shape_cast %128 : vector<1x2x8xf32> to vector<2x8xf32>
    %130 = vector.shape_cast %127 : vector<2x8xf32> to vector<1x2x8xf32>
    tpu.vector_store %arg8[%c0_39, %c0_40, %c0_41], %130 {strides = array<i32>} : memref<1x2x8xf32, #tpu.memory_space<vmem>>, vector<1x2x8xf32>,
    return
  }
  func.func @transform_0(%arg0: i32) -> (i32, i32, i32, i32) {
    %c0_i32 = arith.constant 0 : i32
    %c0_i32_0 = arith.constant 0 : i32
    %c0_i32_1 = arith.constant 0 : i32
    %c0_i32_2 = arith.constant 0 : i32
    return %arg0, %c0_i32, %c0_i32_0, %c0_i32_1 : i32, i32, i32, i32
  }
  func.func @transform_1(%arg0: i32) -> (i32, i32, i32) {
    %c0_i32 = arith.constant 0 : i32
    %c0_i32_0 = arith.constant 0 : i32
    %c0_i32_1 = arith.constant 0 : i32
    return %arg0, %c0_i32, %c0_i32_0 : i32, i32, i32
  }
  func.func @transform_2(%arg0: i32) -> (i32, i32, i32) {
    %c0_i32 = arith.constant 0 : i32
    %c0_i32_0 = arith.constant 0 : i32
    %c0_i32_1 = arith.constant 0 : i32
    return %arg0, %c0_i32, %c0_i32_0 : i32, i32, i32
  }
  func.func @transform_3(%arg0: i32) -> (i32, i32, i32, i32) {
    %c0_i32 = arith.constant 0 : i32
    %c0_i32_0 = arith.constant 0 : i32
    %c0_i32_1 = arith.constant 0 : i32
    %c0_i32_2 = arith.constant 0 : i32
    return %arg0, %c0_i32, %c0_i32_0, %c0_i32_1 : i32, i32, i32, i32
  }
  func.func @transform_4(%arg0: i32) -> (i32, i32, i32) {
    %c0_i32 = arith.constant 0 : i32
    %c0_i32_0 = arith.constant 0 : i32
    %c0_i32_1 = arith.constant 0 : i32
    return %arg0, %c0_i32, %c0_i32_0 : i32, i32, i32
  }
  func.func @transform_5(%arg0: i32) -> (i32, i32, i32, i32) {
    %c0_i32 = arith.constant 0 : i32
    %c0_i32_0 = arith.constant 0 : i32
    %c0_i32_1 = arith.constant 0 : i32
    %c0_i32_2 = arith.constant 0 : i32
    return %arg0, %c0_i32, %c0_i32_0, %c0_i32_1 : i32, i32, i32, i32
  }
  func.func @transform_6(%arg0: i32) -> (i32, i32, i32) {
    %c0_i32 = arith.constant 0 : i32
    %c0_i32_0 = arith.constant 0 : i32
    %c0_i32_1 = arith.constant 0 : i32
    return %arg0, %c0_i32, %c0_i32_0 : i32, i32, i32
  }
  func.func @transform_7(%arg0: i32) -> (i32, i32, i32) {
    %c0_i32 = arith.constant 0 : i32
    %c0_i32_0 = arith.constant 0 : i32
    %c0_i32_1 = arith.constant 0 : i32
    return %arg0, %c0_i32, %c0_i32_0 : i32, i32, i32
  }
}

</mosaic_0001>

<bundles_post_ra>
// kernel: tpu_custom_call.1
= control target key start
LH: loop header
LB: loop body
LE: loop exit
PB: predicated region body
PF: predicated region fallthrough
CT: control target
= control target key end

     0   :  { %v37_v0 = vlaneseq  ;;  %vm54_vm0 = vcmask 130048   ;;  %v628_v7 = vmov 3   ;;  %s838_s0 = inlined_call_operand.vmem [shape: f32[1,2,3,16], index: 0, kind: input, shape index: {}]   ;;  %s839_s1 = inlined_call_operand.vmem [shape: f32[1,2,9], index: 1, kind: input, shape index: {}]   ;;  %s840_s2 = inlined_call_operand.vmem [shape: f32[1,2,3], index: 2, kind: input, shape index: {}]   ;;  %s841_s3 = inlined_call_operand.vmem [shape: f32[1,2,3,8], index: 3, kind: input, shape index: {}]   ;;  %s842_s4 = inlined_call_operand.vmem [shape: f32[1,2,8], index: 4, kind: input, shape index: {}]   ;;  %s843_s5 = inlined_call_operand.vmem [shape: s32[1,2,1,8], index: 5, kind: input, shape index: {}]   ;;  %s844_s6 = inlined_call_operand.vmem [shape: f32[1,2,8], index: 6, kind: input, shape index: {}]   ;;  %s845_s7 = inlined_call_operand.hbm [shape: f32[1,2,8], index: 7, kind: output, shape index: {}]  }
   0x1   :  { %v683_v1 = vld [vmem:[%s843_s5] ss:$0 sm:$0xff]  ;;  %v28_v3 = vld [vmem:[%s838_s0 + $0x4] sm:$0x7]  ;;  %585 = vset.pattern.permute.xlu1 %v628_v7  ;;  %v700_v10 = vld [vmem:[%s843_s5 + $0x1] ss:$0 sm:$0xff] }
   0x2   :  { %v27_v2 = vld [vmem:[%s838_s0] sm:$0x7]  ;;  %v691_v4 = vshrl.u32 %v37_v0, 7  ;;  %v218_v6 = vsel %vm54_vm0, %v28_v3, 0 }
   0x3   :  { %v56_v5 = vsel %vm54_vm0, %v27_v2, 0  ;;  %v695_v9 = vand.u32 4294901760, %v218_v6  ;;  %v705_v11 = vld [vmem:[%s839_s1] sm:$0x3] }
   0x4   :  { %v693_v8 = vand.u32 4294901760, %v56_v5  ;;  %v708_v12 = vadd.s32 8, %v691_v4  ;;  %vm42_vm1 = vcmp.eq.s32.totalorder %v691_v4, %v683_v1  ;;  %425 = vperm.xlu1 %585, %v705_v11  }
   0x5   :  { %12 = vsyncpa [#allocation3], 0  ;;  %v629_v13 = vmov 0.0   ;;  %vm44_vm2 = vcmp.eq.s32.totalorder %v691_v4, %v700_v10  ;;  %v721_v16 = vsub.f32 %v218_v6, %v695_v9  ;;  %v630_v17 = vmov 0   ;;  %v30_v50 = vld [vmem:[%s840_s2] sm:$0x3] }
   0x6   :  { %v553_v14 = vsel %vm42_vm1, 1.0, %v629_v13  ;;  %v77_v15 = vsub.f32 %v56_v5, %v693_v8  ;;  %583 = vset.pattern.permute.xlu0 %v630_v17  ;;  %vm43_vm3 = vcmp.eq.s32.totalorder %v708_v12, %v683_v1  ;;  %vm45_vm4 = vcmp.eq.s32.totalorder %v708_v12, %v700_v10  ;;  %v800_v5 = vld [vmem:[%s842_s4] sm:$0x3]  ;;  %s544_s18 = sshll.u32 %s845_s7, 4  ;;  %s545_s18 = int_to_ptr.hbm [resolvable:$true] %s544_s18 }
   0x7   :  { %v106_v18 = vsub.f32 %v553_v14, %v553_v14  ;;  %v555_v19 = vsel %vm44_vm2, 1.0, %v629_v13  ;;  %381 = vperm.xlu0 %583, %v705_v11   ;;  %v631_v20 = vmov 1.0   ;;  %v554_v21 = vsel %vm43_vm3, 1.0, %v629_v13 }
   0x8   :  { %557 = vmatpush.msk.msra.mxu0 %vm43_vm3, %v631_v20  ;;  %559 = vmatpush.msk.msra.mxu3 %vm43_vm3, %v631_v20  ;;  %v78_v22 = vand.u32 4294901760, %v77_v15  ;;  %v556_v23 = vsel %vm45_vm4, 1.0, %v629_v13  ;;  %v268_v24 = vsub.f32 %v555_v19, %v555_v19  ;;  %v100_v25 = vsub.f32 %v554_v21, %v554_v21 }
   0x9   :  { %v262_v26 = vsub.f32 %v556_v23, %v556_v23  ;;  %v107_v27 = vand.u32 4294901760, %v106_v18  ;;  %v240_v30 = vand.u32 4294901760, %v721_v16  ;;  %v632_v43 = vmov 4  }
   0xa   :  { %558 = vmatpush.msk.msra.mxu0 %vm42_vm1, %v631_v20  ;;  %560 = vmatpush.msk.msra.mxu3 %vm42_vm1, %v631_v20  ;;  %v79_v28 = vsub.f32 %v77_v15, %v78_v22  ;;  %v269_v29 = vand.u32 4294901760, %v268_v24  ;;  %v101_v31 = vand.u32 4294901760, %v100_v25  ;;  %v633_v45 = vmov 1  }
   0xb   :  { %132 = vmatpush.msra.mxu2 %v100_v25  ;;  %163 = vmatmul.f32.vlgmr.msra.gmra.mxu3 %v78_v22  ;;  %v263_v32 = vand.u32 4294901760, %v262_v26  ;;  %v108_v33 = vsub.f32 %v106_v18, %v107_v27  ;;  %v241_v38 = vsub.f32 %v721_v16, %v240_v30  ;;  %v634_v46 = vmov 2  }
   0xc   :  { %v80_v34 = vand.u32 4294901760, %v79_v28  ;;  %v270_v35 = vsub.f32 %v268_v24, %v269_v29  ;;  %v102_v36 = vsub.f32 %v100_v25, %v101_v31  ;;  %184 = vmatpush.msrb.mxu0 %v101_v31  ;;  %586 = vset.pattern.permute.xlu1 %v632_v43  ;;  %v635_v47 = vmov 6   ;;  %v32_v25 = vld [vmem:[%s841_s3 + $0x4] sm:$0x7] }
   0xd   :  { %135 = vmatpush.msra.mxu2 %v106_v18  ;;  %v264_v37 = vsub.f32 %v262_v26, %v263_v32  ;;  %v109_v41 = vand.u32 4294901760, %v108_v33  ;;  %v242_v44 = vand.u32 4294901760, %v241_v38  ;;  %430 = vperm.xlu1 %586, %v705_v11   ;;  %v636_v48 = vmov 8  }
   0xe   :  { %81 = vmatmul.f32.vlgmr.msra.gmra.mxu0 %v80_v34  ;;  %138 = vmatmul.f32.vlgmr.msra.gmra.mxu2 %v77_v15  ;;  %v103_v39 = vand.u32 4294901760, %v102_v36  ;;  %v271_v42 = vand.u32 4294901760, %v270_v35  ;;  %v637_v49 = vmov 5   ;;  %v638_v51 = vmov 7  }
   0xf   :  { %563 = vmatpush.msk.msrb.mxu2 %vm45_vm4, %v631_v20  ;;  %v265_v40 = vand.u32 4294901760, %v264_v37  ;;  %188 = vmatpush.msrb.mxu0 %v107_v27  ;;  %vm494_vm5 = vcmask 58368   ;;  %vm387_vm6 = vcmask 1041409   ;;  %v418_v31 = vrot.slane %v32_v25, 7 }
  0x10   :  { %104 = vmatpush.msra.mxu1 %v103_v39  ;;  %584 = vset.pattern.permute.xlu0 %v633_v45  ;;  %v495_v7 = vsel %vm494_vm5, %v800_v5, 0.0  ;;  %v475_v43 = vrot.slane %v32_v25, 1  ;;  %vm522_vm9 = vcmask 7168   ;;  %vm524_vm10 = vcmask 15360  }
  0x11   :  { %294 = vmatpush.msra.mxu0 %v262_v26  ;;  %266 = vmatpush.msrb.mxu3 %v265_v40  ;;  %vm526_vm11 = vcmask 23552   ;;  %vm528_vm12 = vcmask 31744   ;;  %vm530_vm13 = vcmask 39936   ;;  %vm532_vm14 = vcmask 48128  }
  0x12   :  { %564 = vmatpush.msk.msrb.mxu2 %vm44_vm2, %v631_v20  ;;  %110 = vmatpush.msra.mxu1 %v109_v41  ;;  %vm534_vm15 = vcmask 56320  }
  0x13   :  { %297 = vmatpush.msra.mxu0 %v268_v24  ;;  %272 = vmatpush.msrb.mxu3 %v271_v42  ;;  %v31_v24 = vld [vmem:[%s841_s3] sm:$0x7]  ;;  %s639_s3 = smov [#allocation2]  }
  0x14   :  { %112 = vmatmul.f32.vlgmr.msra.gmra.mxu1 %v693_v8  ;;  %274 = vmatmul.f32.vlgmr.msrb.gmra.mxu3 %v695_v9  ;;  %v474_v36 = vrot.slane %v31_v24, 2 }
  0x15   :  { %561 = vmatpush.msk.msrb.mxu1 %vm43_vm3, %v631_v20  ;;  %346 = vmatpush.msra.mxu2 %v263_v32  ;;  %v446_v32 = vrot.slane %v31_v24, 1 }
  0x16   :  { %190 = vmatmul.f32.vlgmr.msrb.gmra.mxu0 %v693_v8  ;;  %243 = vmatmul.f32.vlgmr.msrb.gmra.mxu2 %v242_v44 }
  0x17   :  { %562 = vmatpush.msk.msrb.mxu1 %vm42_vm1, %v631_v20  ;;  %567 = vmatpush.msk.msra.mxu3 %vm45_vm4, %v631_v20 }
  0x18   :  { %350 = vmatpush.msra.mxu2 %v269_v29  ;;  %392 = vperm.xlu0 %584, %v705_v11  }
  0x19   :  { %565 = vmatpush.msk.msra.mxu1 %vm45_vm4, %v631_v20  ;;  %568 = vmatpush.msk.msra.mxu3 %vm44_vm2, %v631_v20 }
  0x1a   :  { %587 = vset.pattern.permute.xlu2 %v634_v46  ;;  %589 = vset.pattern.permute.xlu1 %v635_v47 }
  0x1b   :  { %566 = vmatpush.msk.msra.mxu1 %vm44_vm2, %v631_v20  ;;  %401 = vperm.xlu2 %587, %v705_v11   ;;  %v807_v20 = vld [vmem:[%s844_s6] sm:$0x3]  ;;  %s542_s6 = sshll.u32 %s639_s3, 4  ;;  %s543_s6 = int_to_ptr.vmem [resolvable:$true] %s542_s6 }
  0x1c   :  { %213 = vmatmul.f32.vlgmr.msrb.gmra.mxu1 %v693_v8  ;;  %375 = vmatmul.f32.vlgmr.msra.gmra.mxu3 %v695_v9  ;;  %v487_v26 = vsub.f32 1.0, %v807_v20  ;;  %598 = vlog2.f32 %v807_v20  ;;  %vm491_vm7 = vcmp.gt.f32.partialorder %v807_v20, 0.5 }
  0x1d   :  { %453 = vperm.xlu1 %589, %v705_v11  }
  0x1e   :  { %300 = vmatmul.f32.vlgmr.msra.gmra.mxu0 %v721_v16  ;;  %352 = vmatmul.f32.vlgmr.msra.gmra.mxu2 %v695_v9  ;;  %600 = vlog2.f32 %v487_v26 }
  0x20   :  { %591 = vset.pattern.permute.xlu0 %v636_v48 }
  0x21   :  { %464 = vperm.xlu0 %591, %v705_v11  }
  0x23   :  { %588 = vset.pattern.permute.xlu2 %v637_v49 }
  0x24   :  { %325 = vmatmul.f32.vlgmr.msra.gmra.mxu1 %v240_v30  ;;  %436 = vperm.xlu2 %588, %v705_v11  }
  0x25   :  { %592 = vset.pattern.permute.xlu1 %v630_v17 }
  0x26   :  { %412 = vperm.xlu1 %592, %v30_v50  }
  0x29   :  { %595 = vset.pattern.permute.xlu0 %v634_v46 }
  0x2c   :  { %590 = vset.pattern.permute.xlu2 %v638_v51 }
  0x2d   :  { %458 = vperm.xlu2 %590, %v705_v11  }
  0x2e   :  { %594 = vset.pattern.permute.xlu1 %v634_v46 }
  0x2f   :  { %470 = vperm.xlu1 %594, %v30_v50  }
  0x35   :  { %593 = vset.pattern.permute.xlu2 %v633_v45 }
  0x36   :  { %442 = vperm.xlu2 %593, %v30_v50  }
  0x5f   :  { %496 = vadd.xlane.f32.xlu2 %v495_v7 }
  0x75   :  { %v402_v55 = vpop.permute.xlu2 %401 }
  0x76   :  { %v426_v52 = vpop.permute.xlu1 %425 }
  0x79   :  { %v382_v62 = vpop.permute.xlu0 %381 }
  0x7e   :  { %v437_v4 = vpop.permute.xlu2 %436 }
  0x7f   :  { %v431_v56 = vpop.permute.xlu1 %430 }
  0x87   :  { %v459_v21 = vpop.permute.xlu2 %458 }
  0x8a   :  { %v393_v11 = vpop.permute.xlu0 %392 }
  0x8b   :  { %v82_v53 = vpop.f32.mrf.mxu0 }
  0x8e   :  { %v164_v54 = vpop.f32.mrf.mxu3 }
  0x8f   :  { %v454_v3 = vpop.permute.xlu1 %453 }
  0x91   :  { %v113_v57 = vpop.f32.mrf.mxu1  ;;  %v139_v58 = vpop.f32.mrf.mxu2 }
  0x92   :  { %v114_v59 = vadd.f32 %v113_v57, %v82_v53  ;;  %v443_v53 = vpop.permute.xlu2 %442  ;;  %v599_v57 = vpop.eup %598 }
  0x93   :  { %v191_v60 = vpop.f32.mrf.mxu0  ;;  %v465_v35 = vpop.permute.xlu0 %464 }
  0x94   :  { %v140_v61 = vadd.f32 %v139_v58, %v114_v59  ;;  %v419_v58 = vsel %vm387_vm6, %v418_v31, %v31_v24 }
  0x96   :  { %v165_v2 = vadd.f32 %v164_v54, %v140_v61 }
  0x97   :  { %v275_v63 = vpop.f32.mrf.mxu3 }
  0x98   :  { %v192_v9 = vadd.f32 %v191_v60, %v165_v2  ;;  %v413_v19 = vpop.permute.xlu1 %412  ;;  %v485_v2 = vmul.f32 0.6931472, %v599_v57 }
  0x99   :  { %v214_v0 = vpop.f32.mrf.mxu1  ;;  %v244_v1 = vpop.f32.mrf.mxu2 }
  0x9a   :  { %v276_v6 = vadd.f32 %v275_v63, %v244_v1  ;;  %v215_v15 = vadd.f32 %v214_v0, %v192_v9  ;;  %v486_v9 = vmax.f32 %v485_v2, -100.0 }
  0x9b   :  { %v301_v8 = vpop.f32.mrf.mxu0 }
  0x9c   :  { %v302_v10 = vadd.f32 %v301_v8, %v276_v6  ;;  %v395_v22 = vrot.slane %v215_v15, 1  ;;  %v404_v27 = vrot.slane %v215_v15, 2 }
  0x9f   :  { %v376_v17 = vpop.f32.mrf.mxu3 }
  0xa1   :  { %v326_v12 = vpop.f32.mrf.mxu1  ;;  %v353_v14 = vpop.f32.mrf.mxu2 }
  0xa2   :  { %v327_v16 = vadd.f32 %v326_v12, %v302_v10  ;;  %v471_v50 = vpop.permute.xlu1 %470  ;;  %v502_v12 = vsub.f32 0.0, %v486_v9 }
  0xa4   :  { %v354_v18 = vadd.f32 %v353_v14, %v327_v16 }
  0xa6   :  { %v377_v23 = vadd.f32 %v376_v17, %v354_v18 }
  0xa8   :  { %v386_v28 = vrot.slane %v377_v23, 7  ;;  %v405_v29 = vrot.slane %v377_v23, 1  ;;  %v396_v30 = vsel %vm387_vm6, %v377_v23, %v395_v22 }
  0xa9   :  { %v398_v37 = vmul.f32 %v396_v30, %v393_v11  ;;  %v461_v39 = vmul.f32 %v459_v21, %v396_v30  ;;  %v433_v41 = vmul.f32 %v431_v56, %v396_v30  ;;  %v447_v56 = vsel %vm387_vm6, %v32_v25, %v446_v32 }
  0xaa   :  { %v388_v33 = vsel %vm387_vm6, %v386_v28, %v215_v15  ;;  %v406_v34 = vsel %vm387_vm6, %v405_v29, %v404_v27  ;;  %v570_v15 = vsel %vm491_vm7, 1.0, %v629_v13 }
  0xab   :  { %v456_v38 = vmul.f32 %v454_v3, %v388_v33  ;;  %v390_v40 = vmul.f32 %v388_v33, %v382_v62  ;;  %v428_v42 = vmul.f32 %v426_v52, %v388_v33  ;;  %v408_v46 = vmul.f32 %v406_v34, %v402_v55  ;;  %v601_v62 = vpop.eup %600 }
  0xac   :  { %v467_v47 = vmul.f32 %v465_v35, %v406_v34  ;;  %v439_v49 = vmul.f32 %v437_v4, %v406_v34  ;;  %v476_v52 = vsel %vm387_vm6, %v475_v43, %v474_v36  ;;  %v489_v6 = vmul.f32 0.6931472, %v601_v62 }
  0xad   :  { %v462_v44 = vadd.f32 %v461_v39, %v456_v38  ;;  %v399_v45 = vadd.f32 %v398_v37, %v390_v40  ;;  %v434_v48 = vadd.f32 %v433_v41, %v428_v42  ;;  %v514_v23 = vmul.f32 %v570_v15, %v800_v5 }
  0xae   :  { %v490_v11 = vmax.f32 %v489_v6, -100.0 }
  0xaf   :  { %v409_v51 = vadd.f32 %v408_v46, %v399_v45  ;;  %v468_v54 = vadd.f32 %v467_v47, %v462_v44  ;;  %v440_v59 = vadd.f32 %v439_v49, %v434_v48  ;;  %v515_v27 = vsel %vm494_vm5, %v514_v23, 0.0 }
  0xb0   :  { %v509_v18 = vsub.f32 0.0, %v490_v11 }
  0xb1   :  { %v415_v60 = vadd.f32 %v413_v19, %v409_v51  ;;  %v473_v61 = vadd.f32 %v471_v50, %v468_v54  ;;  %v445_v63 = vadd.f32 %v443_v53, %v440_v59 }
  0xb3   :  { %v421_v55 = vsub.f32 %v415_v60, %v419_v58  ;;  %v449_v0 = vsub.f32 %v445_v63, %v447_v56  ;;  %v478_v1 = vsub.f32 %v473_v61, %v476_v52 }
  0xb5   :  { %v422_v3 = vmul.f32 %v421_v55, %v421_v55  ;;  %v450_v4 = vmul.f32 %v449_v0, %v449_v0  ;;  %v479_v8 = vmul.f32 %v478_v1, %v478_v1 }
  0xb7   :  { %v451_v7 = vadd.f32 %v450_v4, %v422_v3 }
  0xb9   :  { %v480_v10 = vadd.f32 %v479_v8, %v451_v7 }
  0xbb   :  { %vm481_vm8 = vcmp.lt.f32.partialorder %v480_v10, 0.01 }
  0xbc   :  { %v569_v14 = vsel %vm481_vm8, 1.0, %v629_v13 }
  0xbd   :  { %v498_v16 = vmul.f32 %v569_v14, %v800_v5  ;;  %v507_v17 = vsub.f32 1.0, %v569_v14  ;;  %v518_v26 = vmul.f32 %v569_v14, %v514_v23 }
  0xbf   :  { %v499_v19 = vsel %vm494_vm5, %v498_v16, 0.0  ;;  %v503_v21 = vmul.f32 %v502_v12, %v498_v16  ;;  %v508_v22 = vmul.f32 %v507_v17, %v800_v5  ;;  %v519_v13 = vsel %vm494_vm5, %v518_v26, 0.0 }
  0xc0   :  { %500 = vadd.xlane.f32.xlu0 %v499_v19 }
  0xc1   :  { %v504_v20 = vsel %vm494_vm5, %v503_v21, 0.0  ;;  %v510_v24 = vmul.f32 %v509_v18, %v508_v22 }
  0xc2   :  { %505 = vadd.xlane.f32.xlu1 %v504_v20 }
  0xc3   :  { %v511_v25 = vsel %vm494_vm5, %v510_v24, 0.0 }
  0xc4   :  { %512 = vadd.xlane.f32.xlu2 %v511_v25 }
  0xc8   :  { %520 = vadd.xlane.f32.xlu0 %v519_v13 }
  0xcc   :  { %516 = vadd.xlane.f32.xlu2 %v515_v27 }
  0xd2   :  { %v497_v28 = vpop.xlane.xlu2 %496 }
 0x133   :  { %v501_v29 = vpop.xlane.xlu0 %500 }
 0x134   :  { %v523_v5 = vsel %vm522_vm9, %v497_v28, %v501_v29 }
 0x135   :  { %v506_v31 = vpop.xlane.xlu1 %505 }
 0x136   :  { %v525_v32 = vsel %vm524_vm10, %v523_v5, %v506_v31 }
 0x137   :  { %v513_v30 = vpop.xlane.xlu2 %512 }
 0x138   :  { %v527_v33 = vsel %vm526_vm11, %v525_v32, %v513_v30 }
 0x13b   :  { %v521_v35 = vpop.xlane.xlu0 %520 }
 0x13f   :  { %v517_v34 = vpop.xlane.xlu2 %516 }
 0x140   :  { %v529_v36 = vsel %vm528_vm12, %v527_v33, %v517_v34 }
 0x141   :  { %v531_v37 = vsel %vm530_vm13, %v529_v36, %v521_v35 }
 0x142   :  { %v533_v38 = vsel %vm532_vm14, %v531_v37, 0.0 }
 0x143   :  { %v535_v39 = vsel %vm534_vm15, %v533_v38, 0.0 }
 0x144   :  { %536 = vst.msk [vmem:[#allocation2] sm:$0x3] %vm494_vm5, %v535_v39 }
 0x145   :  { %547 = dma.vmem_to_hbm [thread:$0]  %s543_s6, 32, %s545_s18, [#allocation3]  }
 0x146   :  { %626 = dma.done.wait [#allocation3], 32  }
 0x147   :  { %627 = vsyncadd [#allocation3], 4294967264 }
 0x148   :  { %552 = vsyncpa [#allocation3], 1 }

</bundles_post_ra>
